<compile_context>
chip_gen: v7x
topology: tpu7x:2x2x1
jax: 0.10.0
libtpu: 0.0.40
codegen_flags: <defaults>
</compile_context>

<pallas_src>
import functools

import jax
import jax.numpy as jnp
from jax import lax
from jax.experimental import pallas as pl
from jax.experimental.pallas import tpu as pltpu

_LANE = 128
_SUB = 8
_CHUNK_ROWS = 512          # rows per in-kernel compute chunk (256 KiB of f32)
_PAD_LOGIT = -1e4          # sigmoid(_PAD_LOGIT) == 0.0 in f32 -> zero contribution


def _dice_bce_kernel(x_ref, t_ref, pt_ref, s_ref, b_ref, *, n_total, all_full):
    """Accumulates sum(p*t), sum(p+t), sum(bce) into (1, 8, 128) output blocks.

    Grid is (outer, inner); output blocks are indexed by `outer` only, so they stay
    resident in VMEM and accumulate across the inner ("arbitrary") axis.  The input
    block is streamed through the VPU/EUP in _CHUNK_ROWS-row chunks so the live
    compute working set stays small while the DMA block stays large.
    """
    o = pl.program_id(0)
    i = pl.program_id(1)
    n_inner = pl.num_programs(1)

    @pl.when(i == 0)
    def _init():
        pt_ref[...] = jnp.zeros_like(pt_ref)
        s_ref[...] = jnp.zeros_like(s_ref)
        b_ref[...] = jnp.zeros_like(b_ref)

    block_rows, lane = x_ref.shape
    chunk = min(_CHUNK_ROWS, block_rows)
    n_chunks = block_rows // chunk            # block_rows is a multiple of chunk
    chunk_elems = chunk * lane
    block_elems = block_rows * lane
    # NOTE: int32 scalar math; assumes n_total < 2**31 elements.
    block_start = (o * n_inner + i) * block_elems

    def make_body(masked):
        def body(c, carry):
            pt_acc, s_acc, bce_acc = carry
            r0 = pl.multiple_of(c * chunk, chunk)
            x = x_ref[pl.ds(r0, chunk), :].astype(jnp.float32)
            t = t_ref[pl.ds(r0, chunk), :].astype(jnp.float32)

            if masked:
                # Tail / redundant elements contribute exactly zero:
                # logit -> very negative (sigmoid == 0), target -> 0.
                row = lax.broadcasted_iota(jnp.int32, (chunk, lane), 0)
                col = lax.broadcasted_iota(jnp.int32, (chunk, lane), 1)
                idx = block_start + c * chunk_elems + row * lane + col
                valid = idx < n_total
                x = jnp.where(valid, x, _PAD_LOGIT)
                t = jnp.where(valid, t, 0.0)

            p = jax.nn.sigmoid(x)
            # Exact torch F.binary_cross_entropy semantics: log terms of the
            # (rounded) sigmoid output, clamped at -100.
            log_p = jnp.maximum(jnp.log(p), -100.0)
            log_1mp = jnp.maximum(jnp.log1p(-p), -100.0)
            bce = -(t * log_p + (1.0 - t) * log_1mp)

            r = chunk // _SUB
            # VPU tree-reduce (chunk,128) -> (8,128): pure vreg-wise adds, no XLU.
            pt_acc = pt_acc + (p * t).reshape(r, _SUB, lane).sum(axis=0)
            s_acc = s_acc + (p + t).reshape(r, _SUB, lane).sum(axis=0)
            bce_acc = bce_acc + bce.reshape(r, _SUB, lane).sum(axis=0)
            return pt_acc, s_acc, bce_acc
        return body

    def run(masked):
        zero = jnp.zeros((_SUB, lane), jnp.float32)
        pt, s, b = lax.fori_loop(0, n_chunks, make_body(masked),
                                 (zero, zero, zero), unroll=True)
        pt_ref[0] += pt
        s_ref[0] += s
        b_ref[0] += b

    if all_full:
        # Every block is statically in-bounds: emit no mask code at all.
        run(masked=False)
    else:
        full_block = block_start + block_elems <= n_total

        @pl.when(full_block)
        def _full():
            run(masked=False)

        @pl.when(jnp.logical_not(full_block))
        def _tail():
            run(masked=True)


def dice_bce_loss(outputs, targets, smooth=1.0, weight=None, block_rows=4096):
    """Pallas TPU implementation of DiceBCELoss.forward (returns a scalar f32)."""
    n = int(outputs.size)
    x = jnp.ravel(outputs)
    t = jnp.ravel(targets)

    rows = -(-n // _LANE)                     # ceil(n / 128)
    pad = rows * _LANE - n
    if pad:
        # Sub-row pad only (< 128 elements) so the flat array reshapes to
        # (rows, 128); padded elements are masked out inside the kernel.
        x = jnp.pad(x, (0, pad))
        t = jnp.pad(t, (0, pad))
    x2 = x.reshape(rows, _LANE)
    t2 = t.reshape(rows, _LANE)

    if rows <= block_rows:
        # Single-block path (small inputs): one grid step.
        if rows <= _CHUNK_ROWS:
            block_rows = max(_SUB, -(-rows // _SUB) * _SUB)
        else:
            block_rows = -(-rows // _CHUNK_ROWS) * _CHUNK_ROWS
        n_outer = n_inner = n_blocks = 1
    else:
        # Large inputs: big streaming blocks; 2-wide "parallel" outer axis so the
        # work can shard across both TensorCores on v7x (cheap extra loop level on
        # single-core v5e/v6e).
        block_rows = max(_CHUNK_ROWS, (block_rows // _CHUNK_ROWS) * _CHUNK_ROWS)
        n_blocks = -(-rows // block_rows)
        n_outer = 2 if n_blocks >= 2 else 1
        n_inner = -(-n_blocks // n_outer)

    total_blocks = n_outer * n_inner
    all_full = (n == total_blocks * block_rows * _LANE)

    if total_blocks == n_blocks:
        in_map = lambda o, i: (o * n_inner + i, 0)
    else:
        # One redundant trailing block (odd block count): clamp its index so the
        # DMA stays in-bounds; its contribution is masked to zero in the kernel.
        last = n_blocks - 1
        in_map = lambda o, i: (jnp.minimum(o * n_inner + i, last), 0)
    out_map = lambda o, i: (o, 0, 0)

    part_shape = jax.ShapeDtypeStruct((n_outer, _SUB, _LANE), jnp.float32)
    kernel = functools.partial(_dice_bce_kernel, n_total=n, all_full=all_full)
    bytes_accessed = (n * (x2.dtype.itemsize + t2.dtype.itemsize)
                      + 3 * n_outer * _SUB * _LANE * 4)

    pt_part, s_part, b_part = pl.pallas_call(
        kernel,
        out_shape=(part_shape, part_shape, part_shape),
        grid_spec=pltpu.PrefetchScalarGridSpec(
            num_scalar_prefetch=0,
            grid=(n_outer, n_inner),
            in_specs=[
                pl.BlockSpec((block_rows, _LANE), in_map),
                pl.BlockSpec((block_rows, _LANE), in_map),
            ],
            out_specs=[
                pl.BlockSpec((1, _SUB, _LANE), out_map),
                pl.BlockSpec((1, _SUB, _LANE), out_map),
                pl.BlockSpec((1, _SUB, _LANE), out_map),
            ],
        ),
        compiler_params=pltpu.CompilerParams(
            dimension_semantics=("parallel", "arbitrary"),
            vmem_limit_bytes=32 * 1024 * 1024,
        ),
        cost_estimate=pl.CostEstimate(
            flops=14 * n, transcendentals=3 * n, bytes_accessed=bytes_accessed),
    )(x2, t2)

    # Tiny final reduction + scalar finalize in plain JAX.
    intersection = jnp.sum(pt_part)
    sum_p_plus_t = jnp.sum(s_part)
    sum_bce = jnp.sum(b_part)

    smooth = jnp.float32(smooth)
    dice = 1.0 - (2.0 * intersection + smooth) / (sum_p_plus_t + smooth)
    bce_mean = sum_bce / jnp.float32(n)
    if weight is None:
        loss = (bce_mean + dice) / 2.0
    else:
        w = jnp.float32(weight)
        loss = (1.0 - w) * bce_mean + w * dice
    return loss.astype(jnp.float32)


def _reference_dice_bce(outputs, targets, smooth=1.0, weight=None):
    p = jax.nn.sigmoid(outputs.astype(jnp.float32)).ravel()
    t = targets.astype(jnp.float32).ravel()
    inter = jnp.sum(p * t)
    dice = 1.0 - (2.0 * inter + smooth) / (jnp.sum(p) + jnp.sum(t) + smooth)
    log_p = jnp.maximum(jnp.log(p), -100.0)
    log_1mp = jnp.maximum(jnp.log1p(-p), -100.0)
    bce = jnp.mean(-(t * log_p + (1.0 - t) * log_1mp))
    if weight is None:
        return (bce + dice) / 2.0
    return (1.0 - weight) * bce + weight * dice


if __name__ == "__main__":
    key = jax.random.PRNGKey(0)
    k_out, k_tgt = jax.random.split(key)
    # PyTorch-style NCHW inputs: logits + binary targets.
    outputs = jax.random.normal(k_out, (2, 4, 16, 16), dtype=jnp.float32)
    targets = (jax.random.uniform(k_tgt, (2, 4, 16, 16)) > 0.5).astype(jnp.float32)

    loss = dice_bce_loss(outputs, targets, smooth=1.0, weight=None)
    loss = jax.block_until_ready(loss)

    ref = _reference_dice_bce(outputs, targets, smooth=1.0, weight=None)
    assert jnp.allclose(loss, ref, rtol=1e-5, atol=1e-5), (loss, ref)

    print("KERNEL_OK")
</pallas_src>

<mosaic_0001>
module attributes {stable_mosaic.version = 11 : i64} {
  func.func @_dice_bce_kernel(%arg0: i32, %arg1: i32, %arg2: memref<16x128xf32, #tpu.memory_space<vmem>>, %arg3: memref<16x128xf32, #tpu.memory_space<vmem>>, %arg4: memref<1x8x128xf32, #tpu.memory_space<vmem>>, %arg5: memref<1x8x128xf32, #tpu.memory_space<vmem>>, %arg6: memref<1x8x128xf32, #tpu.memory_space<vmem>>) attributes {dimension_semantics = [#tpu.dimension_semantics<parallel>, #tpu.dimension_semantics<arbitrary>], iteration_bounds = array<i64: 1, 1>, scalar_prefetch = 0 : i64, scratch_operands = 0 : i64, tpu.core_type = #tpu.core_type<tc>, window_params = [{transform_indices = @transform_0, window_bounds = array<i64: 16, 128>}, {transform_indices = @transform_1, window_bounds = array<i64: 16, 128>}, {transform_indices = @transform_2, window_bounds = array<i64: 1, 8, 128>}, {transform_indices = @transform_3, window_bounds = array<i64: 1, 8, 128>}, {transform_indices = @transform_4, window_bounds = array<i64: 1, 8, 128>}]} {
    %c0_i32 = arith.constant 0 : i32
    %0 = arith.cmpi eq, %arg1, %c0_i32 : i32
    %1 = arith.extui %0 : i1 to i32
    %c0_i32_0 = arith.constant 0 : i32
    %2 = arith.cmpi ne, %1, %c0_i32_0 : i32
    scf.if %2 {
      %cst_30 = arith.constant 0.000000e+00 : f32
      %59 = vector.broadcast %cst_30 : f32 to vector<1x8x128xf32>
      %c0_31 = arith.constant 0 : index
      %c0_32 = arith.constant 0 : index
      %c0_33 = arith.constant 0 : index
      %60 = vector.load %arg4[%c0_31, %c0_32, %c0_33] : memref<1x8x128xf32, #tpu.memory_space<vmem>>, vector<1x8x128xf32>
      tpu.vector_store %arg4[%c0_31, %c0_32, %c0_33], %59 {strides = array<i32>} : memref<1x8x128xf32, #tpu.memory_space<vmem>>, vector<1x8x128xf32>,
      %cst_34 = arith.constant 0.000000e+00 : f32
      %61 = vector.broadcast %cst_34 : f32 to vector<1x8x128xf32>
      %c0_35 = arith.constant 0 : index
      %c0_36 = arith.constant 0 : index
      %c0_37 = arith.constant 0 : index
      %62 = vector.load %arg5[%c0_35, %c0_36, %c0_37] : memref<1x8x128xf32, #tpu.memory_space<vmem>>, vector<1x8x128xf32>
      tpu.vector_store %arg5[%c0_35, %c0_36, %c0_37], %61 {strides = array<i32>} : memref<1x8x128xf32, #tpu.memory_space<vmem>>, vector<1x8x128xf32>,
      %cst_38 = arith.constant 0.000000e+00 : f32
      %63 = vector.broadcast %cst_38 : f32 to vector<1x8x128xf32>
      %c0_39 = arith.constant 0 : index
      %c0_40 = arith.constant 0 : index
      %c0_41 = arith.constant 0 : index
      %64 = vector.load %arg6[%c0_39, %c0_40, %c0_41] : memref<1x8x128xf32, #tpu.memory_space<vmem>>, vector<1x8x128xf32>
      tpu.vector_store %arg6[%c0_39, %c0_40, %c0_41], %63 {strides = array<i32>} : memref<1x8x128xf32, #tpu.memory_space<vmem>>, vector<1x8x128xf32>,
    } else {
    }
    %cst = arith.constant 0.000000e+00 : f32
    %3 = vector.broadcast %cst : f32 to vector<8x128xf32>
    %c0_i32_1 = arith.constant 0 : i32
    %c16_i32 = arith.constant 16 : i32
    %4 = arith.muli %c0_i32_1, %c16_i32 : i32
    %5 = tpu.assume_multiple %4, 16 : i32
    %6 = arith.index_cast %5 : i32 to index
    %c0 = arith.constant 0 : index
    %7 = vector.load %arg2[%6, %c0] : memref<16x128xf32, #tpu.memory_space<vmem>>, vector<16x128xf32>
    %8 = arith.index_cast %5 : i32 to index
    %c0_2 = arith.constant 0 : index
    %9 = vector.load %arg3[%8, %c0_2] : memref<16x128xf32, #tpu.memory_space<vmem>>, vector<16x128xf32>
    %10 = arith.negf %7 : vector<16x128xf32>
    %11 = math.exp %10 : vector<16x128xf32>
    %cst_3 = arith.constant 1.000000e+00 : f32
    %12 = vector.broadcast %cst_3 : f32 to vector<16x128xf32>
    %13 = arith.addf %12, %11 : vector<16x128xf32>
    %14 = arith.divf %12, %13 : vector<16x128xf32>
    %15 = math.log %14 : vector<16x128xf32>
    %cst_4 = arith.constant -1.000000e+02 : f32
    %16 = vector.broadcast %cst_4 : f32 to vector<16x128xf32>
    %17 = arith.maximumf %15, %16 : vector<16x128xf32>
    %cst_5 = arith.constant 0.000000e+00 : f32
    %18 = vector.broadcast %cst_5 : f32 to vector<16x128xf32>
    %19 = arith.subf %18, %14 : vector<16x128xf32>
    %20 = math.log1p %19 : vector<16x128xf32>
    %cst_6 = arith.constant -1.000000e+02 : f32
    %21 = vector.broadcast %cst_6 : f32 to vector<16x128xf32>
    %22 = arith.maximumf %20, %21 : vector<16x128xf32>
    %23 = arith.mulf %9, %17 : vector<16x128xf32>
    %cst_7 = arith.constant 1.000000e+00 : f32
    %24 = vector.broadcast %cst_7 : f32 to vector<16x128xf32>
    %25 = arith.subf %24, %9 : vector<16x128xf32>
    %26 = arith.mulf %25, %22 : vector<16x128xf32>
    %27 = arith.addf %23, %26 : vector<16x128xf32>
    %cst_8 = arith.constant 0.000000e+00 : f32
    %28 = vector.broadcast %cst_8 : f32 to vector<16x128xf32>
    %29 = arith.subf %28, %27 : vector<16x128xf32>
    %30 = arith.mulf %14, %9 : vector<16x128xf32>
    %31 = vector.shape_cast %30 : vector<16x128xf32> to vector<2x8x128xf32>
    %cst_9 = arith.constant dense<0.000000e+00> : vector<8x128xf32>
    %32 = vector.multi_reduction <add>, %31, %cst_9 [0] : vector<2x8x128xf32> to vector<8x128xf32>
    %33 = arith.addf %3, %32 : vector<8x128xf32>
    %34 = arith.addf %14, %9 : vector<16x128xf32>
    %35 = vector.shape_cast %34 : vector<16x128xf32> to vector<2x8x128xf32>
    %cst_10 = arith.constant dense<0.000000e+00> : vector<8x128xf32>
    %36 = vector.multi_reduction <add>, %35, %cst_10 [0] : vector<2x8x128xf32> to vector<8x128xf32>
    %37 = arith.addf %3, %36 : vector<8x128xf32>
    %38 = vector.shape_cast %29 : vector<16x128xf32> to vector<2x8x128xf32>
    %cst_11 = arith.constant dense<0.000000e+00> : vector<8x128xf32>
    %39 = vector.multi_reduction <add>, %38, %cst_11 [0] : vector<2x8x128xf32> to vector<8x128xf32>
    %40 = arith.addf %3, %39 : vector<8x128xf32>
    %c1_i32 = arith.constant 1 : i32
    %c0_12 = arith.constant 0 : index
    %c0_13 = arith.constant 0 : index
    %c0_14 = arith.constant 0 : index
    %41 = vector.load %arg4[%c0_12, %c0_13, %c0_14] : memref<1x8x128xf32, #tpu.memory_space<vmem>>, vector<1x8x128xf32>
    %42 = vector.shape_cast %41 : vector<1x8x128xf32> to vector<8x128xf32>
    %43 = arith.addf %42, %33 : vector<8x128xf32>
    %c0_15 = arith.constant 0 : index
    %c0_16 = arith.constant 0 : index
    %c0_17 = arith.constant 0 : index
    %44 = vector.load %arg4[%c0_15, %c0_16, %c0_17] : memref<1x8x128xf32, #tpu.memory_space<vmem>>, vector<1x8x128xf32>
    %45 = vector.shape_cast %44 : vector<1x8x128xf32> to vector<8x128xf32>
    %46 = vector.shape_cast %43 : vector<8x128xf32> to vector<1x8x128xf32>
    tpu.vector_store %arg4[%c0_15, %c0_16, %c0_17], %46 {strides = array<i32>} : memref<1x8x128xf32, #tpu.memory_space<vmem>>, vector<1x8x128xf32>,
    %c0_18 = arith.constant 0 : index
    %c0_19 = arith.constant 0 : index
    %c0_20 = arith.constant 0 : index
    %47 = vector.load %arg5[%c0_18, %c0_19, %c0_20] : memref<1x8x128xf32, #tpu.memory_space<vmem>>, vector<1x8x128xf32>
    %48 = vector.shape_cast %47 : vector<1x8x128xf32> to vector<8x128xf32>
    %49 = arith.addf %48, %37 : vector<8x128xf32>
    %c0_21 = arith.constant 0 : index
    %c0_22 = arith.constant 0 : index
    %c0_23 = arith.constant 0 : index
    %50 = vector.load %arg5[%c0_21, %c0_22, %c0_23] : memref<1x8x128xf32, #tpu.memory_space<vmem>>, vector<1x8x128xf32>
    %51 = vector.shape_cast %50 : vector<1x8x128xf32> to vector<8x128xf32>
    %52 = vector.shape_cast %49 : vector<8x128xf32> to vector<1x8x128xf32>
    tpu.vector_store %arg5[%c0_21, %c0_22, %c0_23], %52 {strides = array<i32>} : memref<1x8x128xf32, #tpu.memory_space<vmem>>, vector<1x8x128xf32>,
    %c0_24 = arith.constant 0 : index
    %c0_25 = arith.constant 0 : index
    %c0_26 = arith.constant 0 : index
    %53 = vector.load %arg6[%c0_24, %c0_25, %c0_26] : memref<1x8x128xf32, #tpu.memory_space<vmem>>, vector<1x8x128xf32>
    %54 = vector.shape_cast %53 : vector<1x8x128xf32> to vector<8x128xf32>
    %55 = arith.addf %54, %40 : vector<8x128xf32>
    %c0_27 = arith.constant 0 : index
    %c0_28 = arith.constant 0 : index
    %c0_29 = arith.constant 0 : index
    %56 = vector.load %arg6[%c0_27, %c0_28, %c0_29] : memref<1x8x128xf32, #tpu.memory_space<vmem>>, vector<1x8x128xf32>
    %57 = vector.shape_cast %56 : vector<1x8x128xf32> to vector<8x128xf32>
    %58 = vector.shape_cast %55 : vector<8x128xf32> to vector<1x8x128xf32>
    tpu.vector_store %arg6[%c0_27, %c0_28, %c0_29], %58 {strides = array<i32>} : memref<1x8x128xf32, #tpu.memory_space<vmem>>, vector<1x8x128xf32>,
    return
  }
  func.func @transform_0(%arg0: i32, %arg1: i32) -> (i32, i32) {
    %c1_i32 = arith.constant 1 : i32
    %0 = arith.muli %arg0, %c1_i32 : i32
    %1 = arith.addi %0, %arg1 : i32
    %c0_i32 = arith.constant 0 : i32
    %c0_i32_0 = arith.constant 0 : i32
    return %1, %c0_i32 : i32, i32
  }
  func.func @transform_1(%arg0: i32, %arg1: i32) -> (i32, i32) {
    %c1_i32 = arith.constant 1 : i32
    %0 = arith.muli %arg0, %c1_i32 : i32
    %1 = arith.addi %0, %arg1 : i32
    %c0_i32 = arith.constant 0 : i32
    %c0_i32_0 = arith.constant 0 : i32
    return %1, %c0_i32 : i32, i32
  }
  func.func @transform_2(%arg0: i32, %arg1: i32) -> (i32, i32, i32) {
    %c0_i32 = arith.constant 0 : i32
    %c0_i32_0 = arith.constant 0 : i32
    %c0_i32_1 = arith.constant 0 : i32
    return %arg0, %c0_i32, %c0_i32_0 : i32, i32, i32
  }
  func.func @transform_3(%arg0: i32, %arg1: i32) -> (i32, i32, i32) {
    %c0_i32 = arith.constant 0 : i32
    %c0_i32_0 = arith.constant 0 : i32
    %c0_i32_1 = arith.constant 0 : i32
    return %arg0, %c0_i32, %c0_i32_0 : i32, i32, i32
  }
  func.func @transform_4(%arg0: i32, %arg1: i32) -> (i32, i32, i32) {
    %c0_i32 = arith.constant 0 : i32
    %c0_i32_0 = arith.constant 0 : i32
    %c0_i32_1 = arith.constant 0 : i32
    return %arg0, %c0_i32, %c0_i32_0 : i32, i32, i32
  }
}

</mosaic_0001>

<bundles_post_ra>
// kernel: tpu_custom_call.1
= control target key start
LH: loop header
LB: loop body
LE: loop exit
PB: predicated region body
PF: predicated region fallthrough
CT: control target
= control target key end

     0   :  { %10 = vsyncpa [#allocation3], 0  ;;  %s434_s0 = inlined_call_operand.hbm [shape: f32[16,128], index: 0, kind: input, shape index: {}]   ;;  %s435_s1 = inlined_call_operand.hbm [shape: f32[16,128], index: 1, kind: input, shape index: {}]   ;;  %s436_s2 = inlined_call_operand.hbm [shape: f32[1,8,128], index: 2, kind: output, shape index: {0}]   ;;  %s437_s3 = inlined_call_operand.hbm [shape: f32[1,8,128], index: 3, kind: output, shape index: {1}]   ;;  %s438_s4 = inlined_call_operand.hbm [shape: f32[1,8,128], index: 4, kind: output, shape index: {2}]  }
   0x1   :  { %11 = vsyncpa [#allocation6], 0 }
   0x2   :  { %12 = vsyncpa [#allocation4], 0 }
   0x3   :  { %13 = vsyncpa [#allocation9], 0  ;;  %s323_s15 = smov [#allocation2]   ;;  %s205_s19 = scalar_lea.hbm %s434_s0, 256 }
   0x4   :  { %s23_s16 = sshll.u32 %s323_s15, 4  ;;  %p206_p0 = scmp.ne.s32.totalorder %s434_s0, %s205_s19  ;;  %s24_s16 = int_to_ptr.vmem [resolvable:$true] %s23_s16 }
   0x5   :  { %p209_p1 = scmp.lt.u32.totalorder %s205_s19, %s434_s0 }
   0x7   :  { %p211_p2 = pnand %p209_p1, %p206_p0 }
   0x9   :  { %214 = shalt.err (!%p211_p2)
}
   0xa   :  { %s215_s24 = scalar_lea.vmem %s24_s16, 256  ;;  %p220_p4 = scmp.lt.s32.totalorder %s24_s16, %s24_s16 }
   0xb   :  { %p216_p3 = scmp.ne.s32.totalorder %s24_s16, %s215_s24  ;;  %p221_p5 = scmp.lt.s32.totalorder %s215_s24, %s215_s24 }
   0xd   :  { %p222_p6 = por %p221_p5, %p220_p4 }
   0xf   :  { %p223_p7 = pnand %p222_p6, %p216_p3 }
  0x11   :  { %226 = shalt.err (!%p223_p7)
}
  0x12   :  { %s324_s25 = smov 128   ;;  %s325_s26 = smov 8  }
  0x13   :  { %29 = dma.hbm_to_vmem [thread:$0]  %s434_s0, 256, %s24_s16, [#allocation3], %s324_s25, %s324_s25, %s325_s26  }
  0x14   :  { %s326_s29 = smov [#allocation5]   ;;  %s227_s7 = scalar_lea.hbm %s435_s1, 256 }
  0x15   :  { %s39_s30 = sshll.u32 %s326_s29, 4  ;;  %p228_p8 = scmp.ne.s32.totalorder %s435_s1, %s227_s7  ;;  %s40_s30 = int_to_ptr.vmem [resolvable:$true] %s39_s30 }
  0x16   :  { %p231_p9 = scmp.lt.u32.totalorder %s227_s7, %s435_s1 }
  0x18   :  { %p233_p10 = pnand %p231_p9, %p228_p8 }
  0x1a   :  { %236 = shalt.err (!%p233_p10)
}
  0x1b   :  { %s237_s12 = scalar_lea.vmem %s40_s30, 256  ;;  %p242_p12 = scmp.lt.s32.totalorder %s40_s30, %s40_s30 }
  0x1c   :  { %p238_p11 = scmp.ne.s32.totalorder %s40_s30, %s237_s12  ;;  %p243_p13 = scmp.lt.s32.totalorder %s237_s12, %s237_s12 }
  0x1e   :  { %p244_p0 = por %p243_p13, %p242_p12 }
  0x20   :  { %p245_p1 = pnand %p244_p0, %p238_p11 }
  0x22   :  { %248 = shalt.err (!%p245_p1)
}
  0x23   :  { %45 = dma.hbm_to_vmem [thread:$0]  %s435_s1, 256, %s40_s30, [#allocation6], %s324_s25, %s324_s25, %s325_s26  }
  0x24   :  { %315 = dma.done.wait [#allocation3], 256  }
  0x25   :  { %316 = vsyncadd [#allocation3], 4294967040 }
  0x26   :  { %317 = dma.done.wait [#allocation6], 256  }
  0x27   :  { %318 = vsyncadd [#allocation6], 4294967040  ;;  %v63_v0 = vld [vmem:[#allocation2] sm:$0xff]  ;;  %v64_v1 = vld [vmem:[#allocation2 + $0x8] sm:$0xff]  ;;  %s327_s1 = smov [#allocation8]   ;;  %s328_s15 = smov [#allocation7]  }
  0x28   :  { %v179_v2 = vmul.f32 -1.442695, %v63_v0  ;;  %v180_v3 = vmul.f32 -1.442695, %v64_v1  ;;  %v379_v9 = vld [vmem:[#allocation5] sm:$0xff]  ;;  %v381_v11 = vld [vmem:[#allocation5 + $0x8] sm:$0xff] }
  0x29   :  { %s152_s14 = sshll.u32 %s327_s1, 4  ;;  %s142_s16 = sshll.u32 %s328_s15, 4  ;;  %s153_s14 = int_to_ptr.vmem [resolvable:$true] %s152_s14  ;;  %s387_s16 = int_to_ptr.vmem [resolvable:$true] %s142_s16 }
  0x2a   :  { %189 = vpow2.f32 %v179_v2  ;;  %s249_s17 = scalar_lea.vmem %s153_s14, 128  ;;  %p254_p3 = scmp.lt.s32.totalorder %s153_s14, %s153_s14 }
  0x2b   :  { %191 = vpow2.f32 %v180_v3  ;;  %p250_p2 = scmp.ne.s32.totalorder %s153_s14, %s249_s17  ;;  %p255_p4 = scmp.lt.s32.totalorder %s249_s17, %s249_s17 }
  0x2d   :  { %p256_p5 = por %p255_p4, %p254_p3 }
  0x2f   :  { %p257_p6 = pnand %p256_p5, %p250_p2 }
  0x34   :  { %v190_v4 = vpop.eup %189 }
  0x35   :  { %v192_v5 = vpop.eup %191  ;;  %v73_v6 = vadd.f32 1.0, %v190_v4 }
  0x36   :  { %v74_v7 = vadd.f32 1.0, %v192_v5 }
  0x37   :  { %193 = vrcp.f32 %v73_v6 }
  0x38   :  { %195 = vrcp.f32 %v74_v7 }
  0x41   :  { %v194_v8 = vpop.eup %193 }
  0x42   :  { %v196_v10 = vpop.eup %195  ;;  %v121_v12 = vadd.f32 %v194_v8, %v379_v9  ;;  %v117_v13 = vmul.f32 %v194_v8, %v379_v9  ;;  %197 = vlog2.f32 %v194_v8  ;;  %v85_v14 = vsub.f32 0.0, %v194_v8 }
  0x43   :  { %v122_v15 = vadd.f32 %v196_v10, %v381_v11  ;;  %v118_v16 = vmul.f32 %v196_v10, %v381_v11  ;;  %199 = vlog2.f32 %v196_v10  ;;  %v86_v17 = vsub.f32 0.0, %v196_v10 }
  0x44   :  { %v87_v18 = vadd.f32 1.0, %v85_v14  ;;  %v90_v22 = vmul.f32 -0.5, %v85_v14 }
  0x45   :  { %v123_v19 = vadd.f32 %v122_v15, %v121_v12  ;;  %v119_v20 = vadd.f32 %v118_v16, %v117_v13  ;;  %v96_v21 = vadd.f32 1.0, %v86_v17  ;;  %v99_v23 = vmul.f32 -0.5, %v86_v17 }
  0x46   :  { %201 = vlog2.f32 %v87_v18 }
  0x47   :  { %203 = vlog2.f32 %v96_v21  ;;  %132 = vst [vmem:[#allocation8] sm:$0xff] %v123_v19  ;;  %129 = vst [vmem:[#allocation7] sm:$0xff] %v119_v20 }
  0x48   :  { %260 = shalt.err (!%p257_p6)
}
  0x49   :  { %s261_s20 = scalar_lea.hbm %s437_s3, 128 }
  0x4a   :  { %p262_p7 = scmp.ne.s32.totalorder %s437_s3, %s261_s20  ;;  %p265_p8 = scmp.lt.u32.totalorder %s261_s20, %s437_s3 }
  0x4c   :  { %p267_p9 = pnand %p265_p8, %p262_p7 }
  0x4e   :  { %270 = shalt.err (!%p267_p9)
}
  0x4f   :  { %155 = dma.vmem_to_hbm [thread:$0]  %s153_s14, 128, %s437_s3, [#allocation9]   ;;  %v91_v24 = vadd.f32 1.0, %v90_v22 }
  0x50   :  { %s271_s27 = scalar_lea.vmem %s387_s16, 128  ;;  %p276_p11 = scmp.lt.s32.totalorder %s387_s16, %s387_s16 }
  0x51   :  { %p272_p10 = scmp.ne.s32.totalorder %s387_s16, %s271_s27  ;;  %p277_p12 = scmp.lt.s32.totalorder %s271_s27, %s271_s27 }
  0x53   :  { %p278_p13 = por %p277_p12, %p276_p11 }
  0x55   :  { %p279_p0 = pnand %p278_p13, %p272_p10 }
  0x57   :  { %282 = shalt.err (!%p279_p0)
}
  0x58   :  { %s283_s30 = scalar_lea.hbm %s436_s2, 128 }
  0x59   :  { %p284_p1 = scmp.ne.s32.totalorder %s436_s2, %s283_s30  ;;  %p287_p2 = scmp.lt.u32.totalorder %s283_s30, %s436_s2 }
  0x5b   :  { %p289_p3 = pnand %p287_p2, %p284_p1 }
  0x5d   :  { %292 = shalt.err (!%p289_p3)
}
  0x5e   :  { %145 = dma.vmem_to_hbm [thread:$0]  %s387_s16, 128, %s436_s2, [#allocation4]   ;;  %v198_v25 = vpop.eup %197  ;;  %v93_v26 = vand.u32 2147483647, %v85_v14  ;;  %v100_v27 = vadd.f32 1.0, %v99_v23  ;;  %v92_v32 = vmul.f32 %v91_v24, %v85_v14  ;;  %v109_v40 = vsub.f32 1.0, %v379_v9 }
  0x5f   :  { %v200_v28 = vpop.eup %199  ;;  %v80_v29 = vmul.f32 0.6931472, %v198_v25  ;;  %v102_v30 = vand.u32 2147483647, %v86_v17  ;;  %v110_v42 = vsub.f32 1.0, %v381_v11  ;;  %s329_s2 = smov [#allocation10]  }
  0x60   :  { %v82_v31 = vmul.f32 0.6931472, %v200_v28  ;;  %v202_v33 = vpop.eup %201  ;;  %vm94_vm0 = vcmp.lt.f32.partialorder %v93_v26, 0.0004427343  ;;  %v101_v35 = vmul.f32 %v100_v27, %v86_v17  ;;  %s162_s10 = sshll.u32 %s329_s2, 4  ;;  %s163_s10 = int_to_ptr.vmem [resolvable:$true] %s162_s10 }
  0x61   :  { %v83_v34 = vmax.f32 %v80_v29, -100.0  ;;  %v204_v36 = vpop.eup %203  ;;  %v89_v38 = vmul.f32 0.6931472, %v202_v33  ;;  %vm103_vm1 = vcmp.lt.f32.partialorder %v102_v30, 0.0004427343  ;;  %s293_s11 = scalar_lea.vmem %s163_s10, 128  ;;  %p298_p5 = scmp.lt.s32.totalorder %s163_s10, %s163_s10 }
  0x62   :  { %v84_v37 = vmax.f32 %v82_v31, -100.0  ;;  %v98_v39 = vmul.f32 0.6931472, %v204_v36  ;;  %p294_p4 = scmp.ne.s32.totalorder %s163_s10, %s293_s11  ;;  %p299_p6 = scmp.lt.s32.totalorder %s293_s11, %s293_s11 }
  0x63   :  { %v95_v41 = vsel %vm94_vm0, %v92_v32, %v89_v38  ;;  %v107_v45 = vmul.f32 %v83_v34, %v379_v9 }
  0x64   :  { %v104_v43 = vsel %vm103_vm1, %v101_v35, %v98_v39  ;;  %v105_v44 = vmax.f32 %v95_v41, -100.0  ;;  %v108_v47 = vmul.f32 %v84_v37, %v381_v11  ;;  %p300_p7 = por %p299_p6, %p298_p5 }
  0x65   :  { %v106_v46 = vmax.f32 %v104_v43, -100.0 }
  0x66   :  { %v111_v48 = vmul.f32 %v109_v40, %v105_v44  ;;  %p301_p8 = pnand %p300_p7, %p294_p4 }
  0x67   :  { %v112_v49 = vmul.f32 %v110_v42, %v106_v46 }
  0x68   :  { %v113_v50 = vadd.f32 %v111_v48, %v107_v45 }
  0x69   :  { %v114_v51 = vadd.f32 %v112_v49, %v108_v47 }
  0x6a   :  { %v115_v52 = vsub.f32 0.0, %v113_v50 }
  0x6b   :  { %v116_v53 = vsub.f32 0.0, %v114_v51 }
  0x6d   :  { %v125_v54 = vadd.f32 %v116_v53, %v115_v52 }
  0x6f   :  { %135 = vst [vmem:[#allocation10] sm:$0xff] %v125_v54 }
  0x70   :  { %304 = shalt.err (!%p301_p8)
}
  0x71   :  { %s305_s13 = scalar_lea.hbm %s438_s4, 128 }
  0x72   :  { %p306_p9 = scmp.ne.s32.totalorder %s438_s4, %s305_s13  ;;  %p309_p10 = scmp.lt.u32.totalorder %s305_s13, %s438_s4 }
  0x74   :  { %p311_p11 = pnand %p309_p10, %p306_p9 }
  0x76   :  { %314 = shalt.err (!%p311_p11)
}
  0x77   :  { %165 = dma.vmem_to_hbm [thread:$0]  %s163_s10, 128, %s438_s4, [#allocation9]  }
  0x78   :  { %319 = dma.done.wait [#allocation4], 128  }
  0x79   :  { %320 = vsyncadd [#allocation4], 4294967168 }
  0x7a   :  { %321 = dma.done.wait [#allocation9], 256  }
  0x7b   :  { %322 = vsyncadd [#allocation9], 4294967040 }
  0x7c   :  { %175 = vsyncpa [#allocation3], 1 }
  0x7d   :  { %176 = vsyncpa [#allocation6], 1 }
  0x7e   :  { %177 = vsyncpa [#allocation4], 1 }
  0x7f   :  { %178 = vsyncpa [#allocation9], 1 }

</bundles_post_ra>
